<compile_context>
chip_gen: v7x
topology: tpu7x:2x2x1
jax: 0.10.0
libtpu: 0.0.40
codegen_flags: <defaults>
</compile_context>

<pallas_src>
import numpy as np
import jax
import jax.numpy as jnp
from jax import lax
from jax.experimental import pallas as pl
from jax.experimental.pallas import tpu as pltpu


# --------------------------------------------------------------------------
# Kernel 1: serial LSTM recurrence over one time chunk.
#   gates_ref : (Tc, B, 4H) f32   precomputed  emb @ W_ih_e + l_total @ W_ih_f + b
#   whh_ref   : (H, 4H)     bf16  recurrent weight (transposed)
#   hall_ref  : (Tc, B, H)  bf16  output chunk of hidden states
#   h_ref/c_ref: (B, H)     f32   persistent VMEM carry across grid steps
# --------------------------------------------------------------------------
def _lstm_recurrence_kernel(gates_ref, whh_ref, hall_ref, h_ref, c_ref):
    H = whh_ref.shape[0]
    Tc = gates_ref.shape[0]

    @pl.when(pl.program_id(0) == 0)
    def _():
        h_ref[...] = jnp.zeros_like(h_ref)
        c_ref[...] = jnp.zeros_like(c_ref)

    def step(s, carry):
        h, c = carry
        # featb is already folded into gates_ref; only the serial term remains.
        g = gates_ref[s] + jnp.dot(h.astype(jnp.bfloat16), whh_ref[...],
                                   preferred_element_type=jnp.float32)
        i_g = jax.nn.sigmoid(g[:, 0 * H:1 * H])
        f_g = jax.nn.sigmoid(g[:, 1 * H:2 * H])
        g_g = jnp.tanh(g[:, 2 * H:3 * H])
        o_g = jax.nn.sigmoid(g[:, 3 * H:4 * H])
        c_new = f_g * c + i_g * g_g
        h_new = o_g * jnp.tanh(c_new)
        hall_ref[s] = h_new.astype(hall_ref.dtype)
        return h_new, c_new

    # Bounded unroll: full unroll for small chunks, depth-4 otherwise (keeps LLO
    # visibility so step t+1's gate load hides step t's MXU/EUP latency).
    h_fin, c_fin = lax.fori_loop(0, Tc, step, (h_ref[...], c_ref[...]),
                                 unroll=True if Tc <= 8 else 4)
    h_ref[...] = h_fin
    c_ref[...] = c_fin


# --------------------------------------------------------------------------
# Kernel 2: deferred vocab projection, one lane-dense MXU GEMM per V-tile.
#   hall_ref : (R, H)  bf16      all hidden states (time-major, flattened rows)
#   wdc_ref  : (H, Vt) bf16      vocab weight tile
#   bdc_ref  : (1, Vt) f32       vocab bias tile
#   mask_ref : (R, 1)  f32       1.0 where t < decode_length else 0.0
#   out_ref  : (R, Vt) f32
# --------------------------------------------------------------------------
def _vocab_proj_kernel(hall_ref, wdc_ref, bdc_ref, mask_ref, out_ref):
    preds = jnp.dot(hall_ref[...], wdc_ref[...],
                    preferred_element_type=jnp.float32) + bdc_ref[...]
    out_ref[...] = (mask_ref[...] * preds).astype(out_ref.dtype)


def init_params(key, feature_dim, embed_dim, vocab_size, hidden_dim):
    ks = jax.random.split(key, 6)
    inp = embed_dim + feature_dim
    k_lstm = 1.0 / np.sqrt(hidden_dim)
    embedding = jax.random.uniform(ks[0], (vocab_size, embed_dim), jnp.float32, -0.1, 0.1)
    w_ih = jax.random.uniform(ks[1], (4 * hidden_dim, inp), jnp.float32, -k_lstm, k_lstm)
    w_hh = jax.random.uniform(ks[2], (4 * hidden_dim, hidden_dim), jnp.float32, -k_lstm, k_lstm)
    b_ih = jax.random.uniform(ks[3], (4 * hidden_dim,), jnp.float32, -k_lstm, k_lstm)
    b_hh = jax.random.uniform(ks[4], (4 * hidden_dim,), jnp.float32, -k_lstm, k_lstm)
    wdc_w = jax.random.uniform(ks[5], (vocab_size, hidden_dim), jnp.float32, -0.1, 0.1)
    wdc_b = jnp.zeros((vocab_size,), jnp.float32)
    return {
        "embedding": embedding,                        # (V, E)
        "wih_e": jnp.asarray(w_ih[:, :embed_dim].T),   # (E, 4H)
        "wih_f": jnp.asarray(w_ih[:, embed_dim:].T),   # (F, 4H)
        "whh": jnp.asarray(w_hh.T),                    # (H, 4H)  f32 master copy
        "b": (b_ih + b_hh)[None, :],                   # (1, 4H)
        "wdc": jnp.asarray(wdc_w.T),                   # (H, V)   f32 master copy
        "bdc": wdc_b[None, :],                         # (1, V)
    }


def plain_decoder_forward(params, l_total, encoded_captions, caption_lengths, chunk_t=4):
    """Mirror of PlainDecoder.forward (eval mode; dropout is inert)."""
    # ---------- glue: reshape, descending (stable) sort, embedding lookup ----------
    l_total = jnp.transpose(l_total, (1, 0, 2, 3))
    B = l_total.shape[0]
    l_total = l_total.reshape(B, -1).astype(jnp.float32)

    encoded_captions = encoded_captions.reshape(B, -1)
    caption_lengths = caption_lengths.reshape(B)

    sort_ind = jnp.argsort(-caption_lengths)           # stable by default in JAX
    caption_lengths = caption_lengths[sort_ind]
    l_total = l_total[sort_ind]
    encoded_captions = encoded_captions[sort_ind]
    embeddings = params["embedding"][encoded_captions]  # (B, L, E)

    # Host control flow (same device->host sync the PyTorch .tolist() does).
    decode_lengths = np.asarray(caption_lengths) - 1
    T = int(decode_lengths.max())
    over0 = int((decode_lengths > 0).sum())

    E = embeddings.shape[2]
    H = params["whh"].shape[0]
    V = params["wdc"].shape[1]

    # Bucket T to a multiple of chunk_t: avoids per-length retrace/compile,
    # keeps the chunked grid uniform; padded steps are masked to exact zeros.
    T_pad = int(-(-T // chunk_t) * chunk_t)
    num_chunks = T_pad // chunk_t

    # ---- hoisted parallel precompute: ALL input-to-hidden gates in one GEMM,
    # ---- with featb (feature projection + biases) folded in once. ----
    emb_t = jnp.transpose(embeddings[:, :T, :], (1, 0, 2)).astype(jnp.float32)   # (T,B,E)
    gates = jnp.dot(emb_t.reshape(T * B, E), params["wih_e"],
                    preferred_element_type=jnp.float32).reshape(T, B, 4 * H)
    featb = jnp.dot(l_total, params["wih_f"],
                    preferred_element_type=jnp.float32) + params["b"]            # (B,4H)
    gates = gates + featb[None, :, :]                                            # folded
    gates = jnp.pad(gates, ((0, T_pad - T), (0, 0), (0, 0)))                     # (T_pad,B,4H)

    whh_bf16 = params["whh"].astype(jnp.bfloat16)
    wdc_bf16 = params["wdc"].astype(jnp.bfloat16)

    # ---------------- kernel 1: recurrence (serial, chunked over T) ----------------
    hall = pl.pallas_call(
        _lstm_recurrence_kernel,
        out_shape=jax.ShapeDtypeStruct((T_pad, B, H), jnp.bfloat16),
        grid_spec=pltpu.PrefetchScalarGridSpec(
            num_scalar_prefetch=0,
            grid=(num_chunks,),
            in_specs=[
                # gates chunk: default double-buffering overlaps the next chunk's
                # HBM->VMEM copy with the current chunk's recurrence.
                pl.BlockSpec((chunk_t, B, 4 * H), lambda t: (t, 0, 0)),
                pl.BlockSpec((H, 4 * H), lambda t: (0, 0)),          # W_hh (resident)
            ],
            out_specs=pl.BlockSpec((chunk_t, B, H), lambda t: (t, 0, 0)),
            scratch_shapes=[pltpu.VMEM((B, H), jnp.float32),          # h carry
                            pltpu.VMEM((B, H), jnp.float32)],         # c carry
        ),
        compiler_params=pltpu.CompilerParams(
            dimension_semantics=("arbitrary",),
            vmem_limit_bytes=64 * 1024 * 1024),
    )(gates, whh_bf16)

    # ---------------- kernel 2: vocab projection, tiled over V (parallel) ----------------
    hall2d = hall.reshape(T_pad * B, H)
    mask = jnp.asarray(
        (np.arange(T_pad)[:, None] < decode_lengths[None, :])
        .astype(np.float32).reshape(T_pad * B, 1))
    Vt = 128 if V % 128 == 0 else V

    preds2d = pl.pallas_call(
        _vocab_proj_kernel,
        out_shape=jax.ShapeDtypeStruct((T_pad * B, V), jnp.float32),
        grid_spec=pltpu.PrefetchScalarGridSpec(
            num_scalar_prefetch=0,
            grid=(V // Vt,),
            in_specs=[
                pl.BlockSpec((T_pad * B, H), lambda v: (0, 0)),
                pl.BlockSpec((H, Vt), lambda v: (0, v)),
                pl.BlockSpec((1, Vt), lambda v: (0, v)),
                pl.BlockSpec((T_pad * B, 1), lambda v: (0, 0)),
            ],
            out_specs=pl.BlockSpec((T_pad * B, Vt), lambda v: (0, v)),
        ),
        compiler_params=pltpu.CompilerParams(
            dimension_semantics=("parallel",),        # both TCs on v7x
            vmem_limit_bytes=64 * 1024 * 1024),
    )(hall2d, wdc_bf16, params["bdc"], mask)

    predictions = preds2d.reshape(T_pad, B, V)[:T].transpose(1, 0, 2)   # (B, T, V)
    return (predictions[:over0],
            encoded_captions[:over0],
            decode_lengths[:over0].tolist())


def _numpy_reference(params, l_total, encoded_captions, caption_lengths):
    """Faithful f32 numpy port of the PyTorch forward (shrinking-batch loop)."""
    l_total = np.transpose(np.asarray(l_total), (1, 0, 2, 3))
    B = l_total.shape[0]
    l_total = l_total.reshape(B, -1).astype(np.float32)
    encoded_captions = np.asarray(encoded_captions).reshape(B, -1)
    caption_lengths = np.asarray(caption_lengths).reshape(B)
    sort_ind = np.argsort(-caption_lengths, kind="stable")
    caption_lengths = caption_lengths[sort_ind]
    l_total = l_total[sort_ind]
    encoded_captions = encoded_captions[sort_ind]
    embeddings = np.asarray(params["embedding"])[encoded_captions]
    H = np.asarray(params["whh"]).shape[0]
    V = np.asarray(params["wdc"]).shape[1]
    wih = np.concatenate([np.asarray(params["wih_e"]), np.asarray(params["wih_f"])], axis=0)
    whh = np.asarray(params["whh"])
    b = np.asarray(params["b"])[0]
    wdc = np.asarray(params["wdc"])
    bdc = np.asarray(params["bdc"])[0]
    decode_lengths = (caption_lengths - 1).tolist()
    max_dec = max(decode_lengths)
    over0 = sum(1 for l in decode_lengths if l > 0)
    h = np.zeros((B, H), np.float32)
    c = np.zeros((B, H), np.float32)
    preds_all = np.zeros((B, max_dec, V), np.float32)
    sigmoid = lambda x: 1.0 / (1.0 + np.exp(-x))
    for t in range(max_dec):
        bt = sum(1 for l in decode_lengths if l > t)
        x = np.concatenate([embeddings[:bt, t, :], l_total[:bt]], axis=1)
        gates = x @ wih + h[:bt] @ whh + b
        i = sigmoid(gates[:, :H]); f = sigmoid(gates[:, H:2 * H])
        g = np.tanh(gates[:, 2 * H:3 * H]); o = sigmoid(gates[:, 3 * H:4 * H])
        c = f * c[:bt] + i * g
        h = o * np.tanh(c)
        preds_all[:bt, t, :] = h @ wdc + bdc
    return preds_all[:over0]


if __name__ == "__main__":
    # shapes consistent with the module:
    #   l_total: (2, B, 2, 4) -> feature_dim = 2*2*4 = 16
    # hidden_dim=128 / vocab_size=256 keep gate slices and output 128-lane aligned.
    feature_dim = 16
    embed_dim = 16
    vocab_size = 256
    hidden_dim = 128
    B = 8
    L = 6           # encoded caption length

    key = jax.random.PRNGKey(0)
    kp, kx, kc = jax.random.split(key, 3)
    params = init_params(kp, feature_dim, embed_dim, vocab_size, hidden_dim)

    l_total = jax.random.normal(kx, (2, B, 2, 4), jnp.float32)
    encoded_captions = jax.random.randint(kc, (B, 1, L), 0, vocab_size, dtype=jnp.int32)
    caption_lengths = jnp.array([6, 3, 5, 2, 4, 6, 3, 5], dtype=jnp.int32).reshape(B, 1, 1)

    preds, sorted_caps, dec_lens = plain_decoder_forward(
        params, l_total, encoded_captions, caption_lengths)
    preds = jax.block_until_ready(preds)

    ref = _numpy_reference(params, l_total, encoded_captions, caption_lengths)
    # bf16 MXU operands (recurrence + vocab GEMM) vs f32 reference -> looser tolerance.
    np.testing.assert_allclose(np.asarray(preds), ref, rtol=3e-2, atol=3e-2)

    print("KERNEL_OK")
</pallas_src>

<mosaic_0001>
module attributes {stable_mosaic.version = 11 : i64} {
  func.func @_lstm_recurrence_kernel(%arg0: i32, %arg1: memref<4x8x512xf32, #tpu.memory_space<vmem>>, %arg2: memref<128x512xbf16, #tpu.memory_space<vmem>>, %arg3: memref<4x8x128xbf16, #tpu.memory_space<vmem>>, %arg4: memref<8x128xf32, #tpu.memory_space<vmem>>, %arg5: memref<8x128xf32, #tpu.memory_space<vmem>>) attributes {dimension_semantics = [#tpu.dimension_semantics<arbitrary>], iteration_bounds = array<i64: 2>, scalar_prefetch = 0 : i64, scratch_operands = 2 : i64, tpu.core_type = #tpu.core_type<tc>, window_params = [{transform_indices = @transform_0, window_bounds = array<i64: 4, 8, 512>}, {pipeline_mode = #tpu.pipeline_mode<synchronous>, transform_indices = @transform_1, window_bounds = array<i64: 128, 512>}, {transform_indices = @transform_2, window_bounds = array<i64: 4, 8, 128>}]} {
    %c0_i32 = arith.constant 0 : i32
    %0 = arith.cmpi eq, %arg0, %c0_i32 : i32
    %1 = arith.extui %0 : i1 to i32
    %c0_i32_0 = arith.constant 0 : i32
    %2 = arith.cmpi ne, %1, %c0_i32_0 : i32
    scf.if %2 {
      %cst_48 = arith.constant 0.000000e+00 : f32
      %155 = vector.broadcast %cst_48 : f32 to vector<8x128xf32>
      %c0_49 = arith.constant 0 : index
      %c0_50 = arith.constant 0 : index
      %156 = vector.load %arg4[%c0_49, %c0_50] : memref<8x128xf32, #tpu.memory_space<vmem>>, vector<8x128xf32>
      tpu.vector_store %arg4[%c0_49, %c0_50], %155 {strides = array<i32>} : memref<8x128xf32, #tpu.memory_space<vmem>>, vector<8x128xf32>,
      %cst_51 = arith.constant 0.000000e+00 : f32
      %157 = vector.broadcast %cst_51 : f32 to vector<8x128xf32>
      %c0_52 = arith.constant 0 : index
      %c0_53 = arith.constant 0 : index
      %158 = vector.load %arg5[%c0_52, %c0_53] : memref<8x128xf32, #tpu.memory_space<vmem>>, vector<8x128xf32>
      tpu.vector_store %arg5[%c0_52, %c0_53], %157 {strides = array<i32>} : memref<8x128xf32, #tpu.memory_space<vmem>>, vector<8x128xf32>,
    } else {
    }
    %c0 = arith.constant 0 : index
    %c0_1 = arith.constant 0 : index
    %3 = vector.load %arg4[%c0, %c0_1] : memref<8x128xf32, #tpu.memory_space<vmem>>, vector<8x128xf32>
    %c0_2 = arith.constant 0 : index
    %c0_3 = arith.constant 0 : index
    %4 = vector.load %arg5[%c0_2, %c0_3] : memref<8x128xf32, #tpu.memory_space<vmem>>, vector<8x128xf32>
    %c0_i32_4 = arith.constant 0 : i32
    %5 = arith.index_cast %c0_i32_4 : i32 to index
    %c0_5 = arith.constant 0 : index
    %c0_6 = arith.constant 0 : index
    %6 = vector.load %arg1[%5, %c0_5, %c0_6] : memref<4x8x512xf32, #tpu.memory_space<vmem>>, vector<1x8x512xf32>
    %7 = vector.shape_cast %6 : vector<1x8x512xf32> to vector<8x512xf32>
    %8 = arith.truncf %3 : vector<8x128xf32> to vector<8x128xbf16>
    %c0_7 = arith.constant 0 : index
    %c0_8 = arith.constant 0 : index
    %9 = vector.load %arg2[%c0_7, %c0_8] : memref<128x512xbf16, #tpu.memory_space<vmem>>, vector<128x512xbf16>
    %cst = arith.constant dense<0.000000e+00> : vector<8x512xf32>
    %10 = tpu.matmul %8, %9, %cst {dimension_numbers = #tpu.dot_dimension_numbers<[1], [0], [0], [1], [0, 0, 1, 1], [], []>} : vector<8x128xbf16>, vector<128x512xbf16>, vector<8x512xf32> -> vector<8x512xf32>
    %11 = arith.addf %7, %10 : vector<8x512xf32>
    %12 = vector.extract_strided_slice %11 {offsets = [0, 0], sizes = [8, 128], strides = [1, 1]} : vector<8x512xf32> to vector<8x128xf32>
    %13 = arith.negf %12 : vector<8x128xf32>
    %14 = math.exp %13 : vector<8x128xf32>
    %cst_9 = arith.constant 1.000000e+00 : f32
    %15 = vector.broadcast %cst_9 : f32 to vector<8x128xf32>
    %16 = arith.addf %15, %14 : vector<8x128xf32>
    %17 = arith.divf %15, %16 : vector<8x128xf32>
    %18 = vector.extract_strided_slice %11 {offsets = [0, 128], sizes = [8, 128], strides = [1, 1]} : vector<8x512xf32> to vector<8x128xf32>
    %19 = arith.negf %18 : vector<8x128xf32>
    %20 = math.exp %19 : vector<8x128xf32>
    %cst_10 = arith.constant 1.000000e+00 : f32
    %21 = vector.broadcast %cst_10 : f32 to vector<8x128xf32>
    %22 = arith.addf %21, %20 : vector<8x128xf32>
    %23 = arith.divf %21, %22 : vector<8x128xf32>
    %24 = vector.extract_strided_slice %11 {offsets = [0, 256], sizes = [8, 128], strides = [1, 1]} : vector<8x512xf32> to vector<8x128xf32>
    %25 = math.tanh %24 : vector<8x128xf32>
    %26 = vector.extract_strided_slice %11 {offsets = [0, 384], sizes = [8, 128], strides = [1, 1]} : vector<8x512xf32> to vector<8x128xf32>
    %27 = arith.negf %26 : vector<8x128xf32>
    %28 = math.exp %27 : vector<8x128xf32>
    %cst_11 = arith.constant 1.000000e+00 : f32
    %29 = vector.broadcast %cst_11 : f32 to vector<8x128xf32>
    %30 = arith.addf %29, %28 : vector<8x128xf32>
    %31 = arith.divf %29, %30 : vector<8x128xf32>
    %32 = arith.mulf %23, %4 : vector<8x128xf32>
    %33 = arith.mulf %17, %25 : vector<8x128xf32>
    %34 = arith.addf %32, %33 : vector<8x128xf32>
    %35 = math.tanh %34 : vector<8x128xf32>
    %36 = arith.mulf %31, %35 : vector<8x128xf32>
    %37 = arith.truncf %36 : vector<8x128xf32> to vector<8x128xbf16>
    %38 = arith.index_cast %c0_i32_4 : i32 to index
    %c0_12 = arith.constant 0 : index
    %c0_13 = arith.constant 0 : index
    %39 = vector.load %arg3[%38, %c0_12, %c0_13] : memref<4x8x128xbf16, #tpu.memory_space<vmem>>, vector<1x8x128xbf16>
    %40 = vector.shape_cast %39 : vector<1x8x128xbf16> to vector<8x128xbf16>
    %41 = vector.shape_cast %37 : vector<8x128xbf16> to vector<1x8x128xbf16>
    tpu.vector_store %arg3[%38, %c0_12, %c0_13], %41 {strides = array<i32>} : memref<4x8x128xbf16, #tpu.memory_space<vmem>>, vector<1x8x128xbf16>,
    %c1_i32 = arith.constant 1 : i32
    %42 = arith.index_cast %c1_i32 : i32 to index
    %c0_14 = arith.constant 0 : index
    %c0_15 = arith.constant 0 : index
    %43 = vector.load %arg1[%42, %c0_14, %c0_15] : memref<4x8x512xf32, #tpu.memory_space<vmem>>, vector<1x8x512xf32>
    %44 = vector.shape_cast %43 : vector<1x8x512xf32> to vector<8x512xf32>
    %45 = arith.truncf %36 : vector<8x128xf32> to vector<8x128xbf16>
    %c0_16 = arith.constant 0 : index
    %c0_17 = arith.constant 0 : index
    %46 = vector.load %arg2[%c0_16, %c0_17] : memref<128x512xbf16, #tpu.memory_space<vmem>>, vector<128x512xbf16>
    %cst_18 = arith.constant dense<0.000000e+00> : vector<8x512xf32>
    %47 = tpu.matmul %45, %46, %cst_18 {dimension_numbers = #tpu.dot_dimension_numbers<[1], [0], [0], [1], [0, 0, 1, 1], [], []>} : vector<8x128xbf16>, vector<128x512xbf16>, vector<8x512xf32> -> vector<8x512xf32>
    %48 = arith.addf %44, %47 : vector<8x512xf32>
    %49 = vector.extract_strided_slice %48 {offsets = [0, 0], sizes = [8, 128], strides = [1, 1]} : vector<8x512xf32> to vector<8x128xf32>
    %50 = arith.negf %49 : vector<8x128xf32>
    %51 = math.exp %50 : vector<8x128xf32>
    %cst_19 = arith.constant 1.000000e+00 : f32
    %52 = vector.broadcast %cst_19 : f32 to vector<8x128xf32>
    %53 = arith.addf %52, %51 : vector<8x128xf32>
    %54 = arith.divf %52, %53 : vector<8x128xf32>
    %55 = vector.extract_strided_slice %48 {offsets = [0, 128], sizes = [8, 128], strides = [1, 1]} : vector<8x512xf32> to vector<8x128xf32>
    %56 = arith.negf %55 : vector<8x128xf32>
    %57 = math.exp %56 : vector<8x128xf32>
    %cst_20 = arith.constant 1.000000e+00 : f32
    %58 = vector.broadcast %cst_20 : f32 to vector<8x128xf32>
    %59 = arith.addf %58, %57 : vector<8x128xf32>
    %60 = arith.divf %58, %59 : vector<8x128xf32>
    %61 = vector.extract_strided_slice %48 {offsets = [0, 256], sizes = [8, 128], strides = [1, 1]} : vector<8x512xf32> to vector<8x128xf32>
    %62 = math.tanh %61 : vector<8x128xf32>
    %63 = vector.extract_strided_slice %48 {offsets = [0, 384], sizes = [8, 128], strides = [1, 1]} : vector<8x512xf32> to vector<8x128xf32>
    %64 = arith.negf %63 : vector<8x128xf32>
    %65 = math.exp %64 : vector<8x128xf32>
    %cst_21 = arith.constant 1.000000e+00 : f32
    %66 = vector.broadcast %cst_21 : f32 to vector<8x128xf32>
    %67 = arith.addf %66, %65 : vector<8x128xf32>
    %68 = arith.divf %66, %67 : vector<8x128xf32>
    %69 = arith.mulf %60, %34 : vector<8x128xf32>
    %70 = arith.mulf %54, %62 : vector<8x128xf32>
    %71 = arith.addf %69, %70 : vector<8x128xf32>
    %72 = math.tanh %71 : vector<8x128xf32>
    %73 = arith.mulf %68, %72 : vector<8x128xf32>
    %74 = arith.truncf %73 : vector<8x128xf32> to vector<8x128xbf16>
    %75 = arith.index_cast %c1_i32 : i32 to index
    %c0_22 = arith.constant 0 : index
    %c0_23 = arith.constant 0 : index
    %76 = vector.load %arg3[%75, %c0_22, %c0_23] : memref<4x8x128xbf16, #tpu.memory_space<vmem>>, vector<1x8x128xbf16>
    %77 = vector.shape_cast %76 : vector<1x8x128xbf16> to vector<8x128xbf16>
    %78 = vector.shape_cast %74 : vector<8x128xbf16> to vector<1x8x128xbf16>
    tpu.vector_store %arg3[%75, %c0_22, %c0_23], %78 {strides = array<i32>} : memref<4x8x128xbf16, #tpu.memory_space<vmem>>, vector<1x8x128xbf16>,
    %c2_i32 = arith.constant 2 : i32
    %79 = arith.index_cast %c2_i32 : i32 to index
    %c0_24 = arith.constant 0 : index
    %c0_25 = arith.constant 0 : index
    %80 = vector.load %arg1[%79, %c0_24, %c0_25] : memref<4x8x512xf32, #tpu.memory_space<vmem>>, vector<1x8x512xf32>
    %81 = vector.shape_cast %80 : vector<1x8x512xf32> to vector<8x512xf32>
    %82 = arith.truncf %73 : vector<8x128xf32> to vector<8x128xbf16>
    %c0_26 = arith.constant 0 : index
    %c0_27 = arith.constant 0 : index
    %83 = vector.load %arg2[%c0_26, %c0_27] : memref<128x512xbf16, #tpu.memory_space<vmem>>, vector<128x512xbf16>
    %cst_28 = arith.constant dense<0.000000e+00> : vector<8x512xf32>
    %84 = tpu.matmul %82, %83, %cst_28 {dimension_numbers = #tpu.dot_dimension_numbers<[1], [0], [0], [1], [0, 0, 1, 1], [], []>} : vector<8x128xbf16>, vector<128x512xbf16>, vector<8x512xf32> -> vector<8x512xf32>
    %85 = arith.addf %81, %84 : vector<8x512xf32>
    %86 = vector.extract_strided_slice %85 {offsets = [0, 0], sizes = [8, 128], strides = [1, 1]} : vector<8x512xf32> to vector<8x128xf32>
    %87 = arith.negf %86 : vector<8x128xf32>
    %88 = math.exp %87 : vector<8x128xf32>
    %cst_29 = arith.constant 1.000000e+00 : f32
    %89 = vector.broadcast %cst_29 : f32 to vector<8x128xf32>
    %90 = arith.addf %89, %88 : vector<8x128xf32>
    %91 = arith.divf %89, %90 : vector<8x128xf32>
    %92 = vector.extract_strided_slice %85 {offsets = [0, 128], sizes = [8, 128], strides = [1, 1]} : vector<8x512xf32> to vector<8x128xf32>
    %93 = arith.negf %92 : vector<8x128xf32>
    %94 = math.exp %93 : vector<8x128xf32>
    %cst_30 = arith.constant 1.000000e+00 : f32
    %95 = vector.broadcast %cst_30 : f32 to vector<8x128xf32>
    %96 = arith.addf %95, %94 : vector<8x128xf32>
    %97 = arith.divf %95, %96 : vector<8x128xf32>
    %98 = vector.extract_strided_slice %85 {offsets = [0, 256], sizes = [8, 128], strides = [1, 1]} : vector<8x512xf32> to vector<8x128xf32>
    %99 = math.tanh %98 : vector<8x128xf32>
    %100 = vector.extract_strided_slice %85 {offsets = [0, 384], sizes = [8, 128], strides = [1, 1]} : vector<8x512xf32> to vector<8x128xf32>
    %101 = arith.negf %100 : vector<8x128xf32>
    %102 = math.exp %101 : vector<8x128xf32>
    %cst_31 = arith.constant 1.000000e+00 : f32
    %103 = vector.broadcast %cst_31 : f32 to vector<8x128xf32>
    %104 = arith.addf %103, %102 : vector<8x128xf32>
    %105 = arith.divf %103, %104 : vector<8x128xf32>
    %106 = arith.mulf %97, %71 : vector<8x128xf32>
    %107 = arith.mulf %91, %99 : vector<8x128xf32>
    %108 = arith.addf %106, %107 : vector<8x128xf32>
    %109 = math.tanh %108 : vector<8x128xf32>
    %110 = arith.mulf %105, %109 : vector<8x128xf32>
    %111 = arith.truncf %110 : vector<8x128xf32> to vector<8x128xbf16>
    %112 = arith.index_cast %c2_i32 : i32 to index
    %c0_32 = arith.constant 0 : index
    %c0_33 = arith.constant 0 : index
    %113 = vector.load %arg3[%112, %c0_32, %c0_33] : memref<4x8x128xbf16, #tpu.memory_space<vmem>>, vector<1x8x128xbf16>
    %114 = vector.shape_cast %113 : vector<1x8x128xbf16> to vector<8x128xbf16>
    %115 = vector.shape_cast %111 : vector<8x128xbf16> to vector<1x8x128xbf16>
    tpu.vector_store %arg3[%112, %c0_32, %c0_33], %115 {strides = array<i32>} : memref<4x8x128xbf16, #tpu.memory_space<vmem>>, vector<1x8x128xbf16>,
    %c3_i32 = arith.constant 3 : i32
    %116 = arith.index_cast %c3_i32 : i32 to index
    %c0_34 = arith.constant 0 : index
    %c0_35 = arith.constant 0 : index
    %117 = vector.load %arg1[%116, %c0_34, %c0_35] : memref<4x8x512xf32, #tpu.memory_space<vmem>>, vector<1x8x512xf32>
    %118 = vector.shape_cast %117 : vector<1x8x512xf32> to vector<8x512xf32>
    %119 = arith.truncf %110 : vector<8x128xf32> to vector<8x128xbf16>
    %c0_36 = arith.constant 0 : index
    %c0_37 = arith.constant 0 : index
    %120 = vector.load %arg2[%c0_36, %c0_37] : memref<128x512xbf16, #tpu.memory_space<vmem>>, vector<128x512xbf16>
    %cst_38 = arith.constant dense<0.000000e+00> : vector<8x512xf32>
    %121 = tpu.matmul %119, %120, %cst_38 {dimension_numbers = #tpu.dot_dimension_numbers<[1], [0], [0], [1], [0, 0, 1, 1], [], []>} : vector<8x128xbf16>, vector<128x512xbf16>, vector<8x512xf32> -> vector<8x512xf32>
    %122 = arith.addf %118, %121 : vector<8x512xf32>
    %123 = vector.extract_strided_slice %122 {offsets = [0, 0], sizes = [8, 128], strides = [1, 1]} : vector<8x512xf32> to vector<8x128xf32>
    %124 = arith.negf %123 : vector<8x128xf32>
    %125 = math.exp %124 : vector<8x128xf32>
    %cst_39 = arith.constant 1.000000e+00 : f32
    %126 = vector.broadcast %cst_39 : f32 to vector<8x128xf32>
    %127 = arith.addf %126, %125 : vector<8x128xf32>
    %128 = arith.divf %126, %127 : vector<8x128xf32>
    %129 = vector.extract_strided_slice %122 {offsets = [0, 128], sizes = [8, 128], strides = [1, 1]} : vector<8x512xf32> to vector<8x128xf32>
    %130 = arith.negf %129 : vector<8x128xf32>
    %131 = math.exp %130 : vector<8x128xf32>
    %cst_40 = arith.constant 1.000000e+00 : f32
    %132 = vector.broadcast %cst_40 : f32 to vector<8x128xf32>
    %133 = arith.addf %132, %131 : vector<8x128xf32>
    %134 = arith.divf %132, %133 : vector<8x128xf32>
    %135 = vector.extract_strided_slice %122 {offsets = [0, 256], sizes = [8, 128], strides = [1, 1]} : vector<8x512xf32> to vector<8x128xf32>
    %136 = math.tanh %135 : vector<8x128xf32>
    %137 = vector.extract_strided_slice %122 {offsets = [0, 384], sizes = [8, 128], strides = [1, 1]} : vector<8x512xf32> to vector<8x128xf32>
    %138 = arith.negf %137 : vector<8x128xf32>
    %139 = math.exp %138 : vector<8x128xf32>
    %cst_41 = arith.constant 1.000000e+00 : f32
    %140 = vector.broadcast %cst_41 : f32 to vector<8x128xf32>
    %141 = arith.addf %140, %139 : vector<8x128xf32>
    %142 = arith.divf %140, %141 : vector<8x128xf32>
    %143 = arith.mulf %134, %108 : vector<8x128xf32>
    %144 = arith.mulf %128, %136 : vector<8x128xf32>
    %145 = arith.addf %143, %144 : vector<8x128xf32>
    %146 = math.tanh %145 : vector<8x128xf32>
    %147 = arith.mulf %142, %146 : vector<8x128xf32>
    %148 = arith.truncf %147 : vector<8x128xf32> to vector<8x128xbf16>
    %149 = arith.index_cast %c3_i32 : i32 to index
    %c0_42 = arith.constant 0 : index
    %c0_43 = arith.constant 0 : index
    %150 = vector.load %arg3[%149, %c0_42, %c0_43] : memref<4x8x128xbf16, #tpu.memory_space<vmem>>, vector<1x8x128xbf16>
    %151 = vector.shape_cast %150 : vector<1x8x128xbf16> to vector<8x128xbf16>
    %152 = vector.shape_cast %148 : vector<8x128xbf16> to vector<1x8x128xbf16>
    tpu.vector_store %arg3[%149, %c0_42, %c0_43], %152 {strides = array<i32>} : memref<4x8x128xbf16, #tpu.memory_space<vmem>>, vector<1x8x128xbf16>,
    %c4_i32 = arith.constant 4 : i32
    %c0_44 = arith.constant 0 : index
    %c0_45 = arith.constant 0 : index
    %153 = vector.load %arg4[%c0_44, %c0_45] : memref<8x128xf32, #tpu.memory_space<vmem>>, vector<8x128xf32>
    tpu.vector_store %arg4[%c0_44, %c0_45], %147 {strides = array<i32>} : memref<8x128xf32, #tpu.memory_space<vmem>>, vector<8x128xf32>,
    %c0_46 = arith.constant 0 : index
    %c0_47 = arith.constant 0 : index
    %154 = vector.load %arg5[%c0_46, %c0_47] : memref<8x128xf32, #tpu.memory_space<vmem>>, vector<8x128xf32>
    tpu.vector_store %arg5[%c0_46, %c0_47], %145 {strides = array<i32>} : memref<8x128xf32, #tpu.memory_space<vmem>>, vector<8x128xf32>,
    return
  }
  func.func @transform_0(%arg0: i32) -> (i32, i32, i32) {
    %c0_i32 = arith.constant 0 : i32
    %c0_i32_0 = arith.constant 0 : i32
    %c0_i32_1 = arith.constant 0 : i32
    return %arg0, %c0_i32, %c0_i32_0 : i32, i32, i32
  }
  func.func @transform_1(%arg0: i32) -> (i32, i32) {
    %c0_i32 = arith.constant 0 : i32
    %c0_i32_0 = arith.constant 0 : i32
    %c0_i32_1 = arith.constant 0 : i32
    return %c0_i32, %c0_i32_0 : i32, i32
  }
  func.func @transform_2(%arg0: i32) -> (i32, i32, i32) {
    %c0_i32 = arith.constant 0 : i32
    %c0_i32_0 = arith.constant 0 : i32
    %c0_i32_1 = arith.constant 0 : i32
    return %arg0, %c0_i32, %c0_i32_0 : i32, i32, i32
  }
}

</mosaic_0001>

<bundles_post_ra>
// kernel: tpu_custom_call.1
= control target key start
LH: loop header
LB: loop body
LE: loop exit
PB: predicated region body
PF: predicated region fallthrough
CT: control target
= control target key end

     0   :  { %7 = vsyncpa [#allocation5], 0  ;;  %s2474_s0 = inlined_call_operand.hbm [shape: f32[8,8,512], index: 0, kind: input, shape index: {}]   ;;  %s2475_s1 = inlined_call_operand.hbm [shape: bf16[128,512], index: 1, kind: input, shape index: {}]   ;;  %s2476_s2 = inlined_call_operand.hbm [shape: bf16[8,8,128], index: 2, kind: output, shape index: {}]  }
   0x1   :  { %9 = vsyncpa [#allocation5 + $0x1], 0 }
   0x2   :  { %10 = vsyncpa [#allocation8], 0 }
   0x3   :  { %11 = vsyncpa [#allocation6], 0 }
   0x4   :  { %13 = vsyncpa [#allocation6 + $0x1], 0  ;;  %s2036_s9 = smov 0   ;;  %s2038_s10 = smov 0  }
   0x5   :  { %s2040_s11 = smov 0   ;;  %s2042_s12 = smov 0  }
   0x6 LB: > { %s2057_s13 = sadd.s32 4294967295, %s2008_s12   ;;  %s1527_s14 = sadd.s32 4294967294, %s2008_s12   ;;  %s2008_s12 = sphi %s2042_s12, %s2497_s12   ;;  %s2004_s11 = sphi %s2040_s11, %s2496_s11   ;;  %s2000_s10 = sphi %s2038_s10, %s2495_s10   ;;  %s1996_s9 = sphi %s2036_s9, %s2494_s9  }
   0x7   : > { %p39_p0 = scmp.ne.s32.totalorder %s2000_s10, %s1996_s9  ;;  %p2477_p1 = scmp.eq.s32.totalorder %s2057_s13, 0 }
   0x8   : > { %p90_p3 = scmp.eq.s32.totalorder %s1527_s14, 1  ;;  %p1528_p5 = scmp.ge.s32.totalorder %s2008_s12, 1 }
   0x9   : > { %p2066_p4 = por %p2477_p1, %p39_p0  ;;  %p97_p7 = scmp.lt.s32.totalorder %s2008_s12, 3 }
   0xa   : > { %p2071_p6 = por %p90_p3, %p39_p0  ;;  %s2010_s18 = smov [#allocation7]  }
   0xb   : > { %s2480_s15 = scalar_select %p2066_p4, 1, 0 }
   0xc   : > { %s2481_s16 = scalar_select %p2071_p6, 1, 0 }
   0xd   : > { %p2077_p9 = pnand %p1528_p5, %p97_p7  ;;  %s109_s19 = sshll.u32 %s2010_s18, 4  ;;  %s2081_s19 = int_to_ptr.vmem [resolvable:$true] %s109_s19 }
   0xe   : > { %s2093_s21 = sadd.s32 1, %s2008_s12   ;;  %s26_s22 = sadd.s32 1, %s2004_s11 }
   0xf   : > { %s2482_s17 = scalar_select %p2077_p9, 1, 0 }
  0x10   : > { %p1711_p10 = pneg %p2077_p9  ;;  %s23_s23 = ssub.s32 %s2008_s12, %s2093_s21 }
  0x11   : > { %s1880_s26 = scalar_lea.hbm %s2475_s1, 4096 }
  0x12   : > { %p2088_p12 = pnand %p1711_p10, %p2477_p1  ;;  %p1881_p13 = scmp.ne.s32.totalorder %s2475_s1, %s1880_s26 }
  0x13   : > { %p1887_p7 = scmp.lt.u32.totalorder %s1880_s26, %s2475_s1 }
  0x14   : > { %p1882_p0 = pneg %p2088_p12 }
  0x16   : > { %p1883_p3 = pnand %p1882_p0, %p1881_p13 }
  0x18   : > { %p1884_p5 = pneg %p1883_p3 }
  0x1a   : > { %p1889_p10 = pnand %p1887_p7, %p1884_p5 }
  0x1c   : > { %1892 = shalt.err (!%p1889_p10)
}
  0x1d   : > { %s1893_s3 = scalar_lea.vmem %s2081_s19, 4096  ;;  %p1901_p2 = scmp.lt.s32.totalorder %s2081_s19, %s2081_s19 }
  0x1e   : > { %p1894_p11 = scmp.ne.s32.totalorder %s2081_s19, %s1893_s3  ;;  %p1902_p6 = scmp.lt.s32.totalorder %s1893_s3, %s1893_s3 }
  0x20   : > { %p1896_p8 = pnand %p1894_p11, %p1882_p0  ;;  %p1903_p4 = por %p1902_p6, %p1901_p2 }
  0x22   : > { %p1897_p1 = pneg %p1896_p8 }
  0x24   : > { %p1904_p9 = pnand %p1903_p4, %p1897_p1 }
  0x26   : > { %1907 = shalt.err (!%p1904_p9)
}
  0x27   : > { %s2011_s4 = smov 256   ;;  %s2012_s5 = smov 16  }
  0x28   : > { %1714 = dma.hbm_to_vmem [thread:$0]  (!%p2088_p12), %s2475_s1, 4096, %s2081_s19, [#allocation8], %s2011_s4, %s2011_s4, %s2012_s5  }
  0x29   : > { %p24_p2 = scmp.eq.s32.totalorder %s23_s23, 0  ;;  %p33_p1 = scmp.ne.s32.totalorder %s2004_s11, %s2000_s10 }
  0x2a   : > { %p34_p4 = scmp.eq.s32.totalorder %s2008_s12, 0  ;;  %p1724_p6 = scmp.lt.s32.totalorder %s2008_s12, 2 }
  0x2b   : > { %s2124_s8 = scalar_select %p24_p2, %s2004_s11, %s26_s22  }
  0x2c   : > { %p35_p8 = por %p34_p4, %p33_p1  ;;  %p2484_p9 = scmp.eq.s32.totalorder %s2057_s13, 1 }
  0x2d   : > { %s123_s18 = sand.u32 1, %s2004_s11   ;;  %s1701_s24 = sshll.u32 %s2008_s12, 11 }
  0x2e   : > { %p2128_p11 = por %p2484_p9, %p33_p1  ;;  %s1531_s25 = sshll.u32 %s123_s18, 7 }
  0x2f   : > { %s2137_s27 = scalar_lea.hbm %s2474_s0, %s1701_s24  ;;  %s127_s19 = scalar_lea.vmem [#allocation4], %s1531_s25 }
  0x30   : > { %s135_s22 = sshll.u32 %s127_s19, 4  ;;  %p2139_p12 = pnand %p1724_p6, %p35_p8  ;;  %s2143_s22 = int_to_ptr.vmem [resolvable:$true] %s135_s22 }
  0x31   : > { %s2145_s28 = scalar_lea.sflag [#allocation5], %s123_s18  ;;  %s1908_s29 = scalar_lea.hbm %s2137_s27, 2048 }
  0x32   : > { %p1909_p13 = scmp.ne.s32.totalorder %s2137_s27, %s1908_s29  ;;  %p1910_p0 = pneg %p2139_p12 }
  0x33   : > { %s1913_s4 = scalar_lea.hbm %s2474_s0, 4096  ;;  %p1914_p7 = scmp.lt.u32.totalorder %s2137_s27, %s2474_s0 }
  0x34   : > { %p1911_p3 = pnand %p1910_p0, %p1909_p13  ;;  %p1915_p10 = scmp.lt.u32.totalorder %s1913_s4, %s1908_s29 }
  0x35   : > { %p1917_p1 = scmp.lt.u32.totalorder %s1908_s29, %s2137_s27 }
  0x36   : > { %p1912_p5 = pneg %p1911_p3  ;;  %p1916_p2 = por %p1915_p10, %p1914_p7 }
  0x38   : > { %p1918_p4 = por %p1917_p1, %p1916_p2 }
  0x3a   : > { %p1919_p6 = pnand %p1918_p4, %p1912_p5 }
  0x3c   : > { %1922 = shalt.err (!%p1919_p6)
}
  0x3d   : > { %s1923_s7 = scalar_lea.vmem %s2143_s22, 2048  ;;  %s2013_s18 = smov [#allocation4]  }
  0x3e   : > { %p1924_p8 = scmp.ne.s32.totalorder %s2143_s22, %s1923_s7  ;;  %s1928_s24 = sshll.u32 %s2013_s18, 4  ;;  %s1929_s24 = int_to_ptr.vmem [resolvable:$false] %s1928_s24 }
  0x3f   : > { %s1930_s25 = scalar_lea.vmem %s1929_s24, 4096  ;;  %p1931_p3 = scmp.lt.s32.totalorder %s2143_s22, %s1929_s24 }
  0x40   : > { %p1926_p9 = pnand %p1924_p8, %p1910_p0  ;;  %p1932_p7 = scmp.lt.s32.totalorder %s1930_s25, %s1923_s7 }
  0x42   : > { %p1927_p13 = pneg %p1926_p9  ;;  %p1933_p10 = por %p1932_p7, %p1931_p3 }
  0x44   : > { %p1934_p2 = pnand %p1933_p10, %p1927_p13 }
  0x46   : > { %1937 = shalt.err (!%p1934_p2)
}
  0x47   : > { %s2014_s20 = smov 512   ;;  %s2015_s26 = smov 32  }
  0x48   : > { %1718 = dma.hbm_to_vmem [thread:$0]  (!%p2139_p12), %s2137_s27, 2048, %s2143_s22, %s2145_s28, %s2014_s20, %s2014_s20, %s2015_s26  }
  0x49   : > { %p2487_p0 = scmp.ne.s32.totalorder %s2482_s17, 0 }
  0x4a   : > { %s2176_s19 = sand.u32 (!%p2487_p0), 1, %s2000_s10   ;;  %p2488_p5 = scmp.ne.s32.totalorder (!%p2487_p0), %s2480_s15, 0 }
  0x4b   : > { %147 = sbr.rel (%p2487_p0) target bundleno = 1184 (0x4a0), region = 28  ;;  %s1536_s29 = sshll.u32 (!%p2487_p0), %s2176_s19, 7 }
  0x4c   : > { %s150_s30 = scalar_lea.sflag (!%p2487_p0), [#allocation5], %s2176_s19  ;;  %s2180_s3 = scalar_lea.vmem (!%p2487_p0), [#allocation4], %s1536_s29 }
  0x52   : > { %1983 = dma.done.wait (%p2488_p5), %s150_s30, 2048  }
  0x53   : > { %1985 = vsyncadd (%p2488_p5), %s150_s30, 4294965248  ;;  %p2489_p12 = scmp.eq.s32.totalorder %s2057_s13, 0 }
  0x55   : > { %1987 = dma.done.wait (%p2489_p12), [#allocation8], 4096   ;;  %p2490_p1 = pmov %p2489_p12 }
  0x56   : > { %s1538_s17 = sshll.u32 %s2176_s19, 4  ;;  %p2491_p4 = scmp.ne.s32.totalorder %s2057_s13, 0 }
  0x57   : > { %1989 = vsyncadd (%p2490_p1), [#allocation8], 4294963200  ;;  %s2191_s27 = scalar_lea.vmem [#allocation9], %s1538_s17  ;;  %v2016_v0 = vmov (!%p2491_p4), 0.0  }
  0x58   : > { %184 = sbr.rel (%p2491_p4) target bundleno = 95 (0x5f), region = 40  ;;  %185 = vst [vmem:[#allocation2] sm:$0xff] (!%p2491_p4), %v2016_v0  ;;  %186 = vst [vmem:[#allocation3] sm:$0xff] (!%p2491_p4), %v2016_v0 }
  0x5f PF: > { %v2195_v1 = vld [vmem:[#allocation7 + $0x4] ss:$16 sps:$4 sm:$0xff]   ;;  %v2197_v2 = vld [vmem:[#allocation7] ss:$16 sps:$4 sm:$0xff]   ;;  %v2017_v3 = vmov 0   ;;  %v190_v37 = vld [vmem:[%s2180_s3 + $0x8] sm:$0xff] }
  0x60   : > { %418 = vmatprep.mubr.bf16.mxu0 %v2017_v3  ;;  %459 = vmatprep.mubr.bf16.mxu1 %v2017_v3  ;;  %v2202_v4 = vld [vmem:[#allocation7 + $0x24] ss:$16 sps:$4 sm:$0xff]   ;;  %v2205_v5 = vld [vmem:[#allocation7 + $0x20] ss:$16 sps:$4 sm:$0xff]   ;;  %v2210_v7 = vld [vmem:[#allocation7 + $0xc] ss:$16 sps:$4 sm:$0xff]  }
  0x61   : > { %386 = vmatprep.subr.bf16.mxu0 %v2195_v1  ;;  %v2208_v6 = vld [vmem:[#allocation7 + $0x44] ss:$16 sps:$4 sm:$0xff]   ;;  %v2212_v8 = vld [vmem:[#allocation7 + $0x8] ss:$16 sps:$4 sm:$0xff]   ;;  %v2215_v9 = vld [vmem:[#allocation7 + $0x40] ss:$16 sps:$4 sm:$0xff]   ;;  %427 = vmatprep.subr.bf16.mxu1 %v2210_v7 }
  0x62   : > { %387 = vmatpush1.bf16.msra.mxu0 %v2197_v2  ;;  %v2219_v10 = vld [vmem:[#allocation7 + $0x64] ss:$16 sps:$4 sm:$0xff]   ;;  %428 = vmatpush1.bf16.msra.mxu1 %v2212_v8  ;;  %v2222_v11 = vld [vmem:[#allocation7 + $0x2c] ss:$16 sps:$4 sm:$0xff]   ;;  %v2224_v12 = vld [vmem:[#allocation7 + $0x28] ss:$16 sps:$4 sm:$0xff]  }
  0x63   : > { %388 = vmatprep.subr.bf16.mxu0 %v2202_v4  ;;  %429 = vmatprep.subr.bf16.mxu1 %v2222_v11  ;;  %v2228_v13 = vld [vmem:[#allocation7 + $0x60] ss:$16 sps:$4 sm:$0xff]   ;;  %v2230_v14 = vld [vmem:[#allocation7 + $0x84] ss:$16 sps:$4 sm:$0xff]   ;;  %v2232_v15 = vld [vmem:[#allocation7 + $0x4c] ss:$16 sps:$4 sm:$0xff]  }
  0x64   : > { %v2236_v16 = vld [vmem:[#allocation7 + $0x48] ss:$16 sps:$4 sm:$0xff]   ;;  %v2239_v17 = vld [vmem:[#allocation7 + $0x6c] ss:$16 sps:$4 sm:$0xff]   ;;  %v2242_v18 = vld [vmem:[#allocation7 + $0x80] ss:$16 sps:$4 sm:$0xff]  }
  0x65   : > { %v2245_v19 = vld [vmem:[#allocation7 + $0xa4] ss:$16 sps:$4 sm:$0xff]   ;;  %v2248_v20 = vld [vmem:[#allocation7 + $0x68] ss:$16 sps:$4 sm:$0xff]   ;;  %v2251_v21 = vld [vmem:[#allocation7 + $0x8c] ss:$16 sps:$4 sm:$0xff]  }
  0x66   : > { %389 = vmatpush1.bf16.msra.mxu0 %v2205_v5  ;;  %430 = vmatpush1.bf16.msra.mxu1 %v2224_v12  ;;  %v2253_v22 = vld [vmem:[#allocation7 + $0xa0] ss:$16 sps:$4 sm:$0xff]   ;;  %v2256_v23 = vld [vmem:[#allocation7 + $0xc4] ss:$16 sps:$4 sm:$0xff]   ;;  %v2260_v24 = vld [vmem:[#allocation7 + $0x88] ss:$16 sps:$4 sm:$0xff]  }
  0x67   : > { %390 = vmatprep.subr.bf16.mxu0 %v2208_v6  ;;  %431 = vmatprep.subr.bf16.mxu1 %v2232_v15  ;;  %v2263_v25 = vld [vmem:[#allocation7 + $0xac] ss:$16 sps:$4 sm:$0xff]   ;;  %v2266_v26 = vld [vmem:[#allocation7 + $0xc0] ss:$16 sps:$4 sm:$0xff]   ;;  %v2269_v27 = vld [vmem:[#allocation7 + $0xe4] ss:$16 sps:$4 sm:$0xff]  }
  0x68   : > { %v2272_v28 = vld [vmem:[#allocation7 + $0xa8] ss:$16 sps:$4 sm:$0xff]   ;;  %v2275_v29 = vld [vmem:[#allocation7 + $0xcc] ss:$16 sps:$4 sm:$0xff]   ;;  %v2278_v30 = vld [vmem:[#allocation7 + $0xe0] ss:$16 sps:$4 sm:$0xff]  }
  0x69   : > { %v187_v31 = vld [vmem:[#allocation2] sm:$0xff]  ;;  %v2282_v32 = vld [vmem:[#allocation7 + $0xc8] ss:$16 sps:$4 sm:$0xff]   ;;  %v2285_v33 = vld [vmem:[#allocation7 + $0xec] ss:$16 sps:$4 sm:$0xff]   ;;  %s1702_s15 = sshll.u32 %s2057_s13, 8 }
  0x6a   : > { %391 = vmatpush1.bf16.msra.mxu0 %v2215_v9  ;;  %432 = vmatpush1.bf16.msra.mxu1 %v2236_v16  ;;  %v193_v34 = vpack.c.bf16 %v187_v31, %v187_v31  ;;  %v2289_v35 = vld [vmem:[#allocation7 + $0xe8] ss:$16 sps:$4 sm:$0xff]   ;;  %v189_v36 = vld [vmem:[%s2180_s3] sm:$0xff]  ;;  %v191_v52 = vld [vmem:[%s2180_s3 + $0x10] sm:$0xff]  ;;  %s1444_s22 = sshll.u32 %s2191_s27, 4  ;;  %s2427_s4 = scalar_lea.hbm %s2476_s2, %s1702_s15  ;;  %s2429_s22 = int_to_ptr.vmem [resolvable:$true] %s1444_s22 }
  0x6b   : > { %392 = vmatprep.subr.bf16.mxu0 %v2219_v10  ;;  %433 = vmatprep.subr.bf16.mxu1 %v2239_v17  ;;  %v192_v46 = vld [vmem:[%s2180_s3 + $0x18] sm:$0xff]  ;;  %s1431_s5 = scalar_lea.sflag [#allocation6], %s2176_s19  ;;  %s1938_s6 = scalar_lea.vmem %s2429_s22, 256 }
  0x6c   : > { %v188_v61 = vld [vmem:[#allocation3] sm:$0xff]  ;;  %p1939_p6 = scmp.ne.s32.totalorder %s2429_s22, %s1938_s6  ;;  %s2018_s13 = smov [#allocation9]  }
  0x6d   : > { %s1942_s7 = sshll.u32 %s2018_s13, 4  ;;  %s1943_s7 = int_to_ptr.vmem [resolvable:$false] %s1942_s7 }
  0x6e   : > { %393 = vmatpush1.bf16.msra.mxu0 %v2228_v13  ;;  %434 = vmatpush1.bf16.msra.mxu1 %v2248_v20  ;;  %p1940_p8 = pnand %p1939_p6, %p2128_p11  ;;  %s1944_s18 = scalar_lea.vmem %s1943_s7, 512 }
  0x6f   : > { %394 = vmatprep.subr.bf16.mxu0 %v2230_v14  ;;  %435 = vmatprep.subr.bf16.mxu1 %v2251_v21  ;;  %p1945_p13 = scmp.lt.s32.totalorder %s2429_s22, %s1943_s7  ;;  %p1946_p3 = scmp.lt.s32.totalorder %s1944_s18, %s1938_s6 }
  0x70   : > { %p1941_p9 = pneg %p1940_p8 }
  0x71   : > { %p1947_p7 = por %p1946_p3, %p1945_p13 }
  0x72   : > { %395 = vmatpush1.bf16.msra.mxu0 %v2242_v18  ;;  %436 = vmatpush1.bf16.msra.mxu1 %v2260_v24 }
  0x73   : > { %396 = vmatprep.subr.bf16.mxu0 %v2245_v19  ;;  %437 = vmatprep.subr.bf16.mxu1 %v2263_v25  ;;  %p1948_p10 = pnand %p1947_p7, %p1941_p9 }
  0x76   : > { %397 = vmatpush1.bf16.msra.mxu0 %v2253_v22  ;;  %438 = vmatpush1.bf16.msra.mxu1 %v2272_v28 }
  0x77   : > { %398 = vmatprep.subr.bf16.mxu0 %v2256_v23  ;;  %439 = vmatprep.subr.bf16.mxu1 %v2275_v29 }
  0x7a   : > { %399 = vmatpush1.bf16.msra.mxu0 %v2266_v26  ;;  %440 = vmatpush1.bf16.msra.mxu1 %v2282_v32 }
  0x7b   : > { %400 = vmatprep.subr.bf16.mxu0 %v2269_v27  ;;  %441 = vmatprep.subr.bf16.mxu1 %v2285_v33 }
  0x7e   : > { %401 = vmatpush1.bf16.msra.mxu0 %v2278_v30  ;;  %442 = vmatpush1.bf16.msra.mxu1 %v2289_v35 }
  0x7f   : > { %695 = vmatprep.subr.bf16.mxu0 %v2195_v1  ;;  %736 = vmatprep.subr.bf16.mxu1 %v2210_v7 }
  0x81   : > { %419 = vmatmul.mubr.bf16.vlgmr.msra.gmra.mrb[0].mxu0 %v193_v34  ;;  %460 = vmatmul.mubr.bf16.vlgmr.msra.gmra.mrb[0].mxu1 %v193_v34 }
  0x82   : > { %696 = vmatpush1.bf16.msra.mxu0 %v2197_v2  ;;  %727 = vmatprep.mubr.bf16.mxu0 %v2017_v3 }
  0x83   : > { %697 = vmatprep.subr.bf16.mxu0 %v2202_v4  ;;  %737 = vmatpush1.bf16.msra.mxu1 %v2212_v8 }
  0x84   : > { %738 = vmatprep.subr.bf16.mxu1 %v2222_v11  ;;  %768 = vmatprep.mubr.bf16.mxu1 %v2017_v3 }
  0x86   : > { %698 = vmatpush1.bf16.msra.mxu0 %v2205_v5 }
  0x87   : > { %699 = vmatprep.subr.bf16.mxu0 %v2208_v6  ;;  %739 = vmatpush1.bf16.msra.mxu1 %v2224_v12 }
  0x88   : > { %740 = vmatprep.subr.bf16.mxu1 %v2232_v15 }
  0x8a   : > { %700 = vmatpush1.bf16.msra.mxu0 %v2215_v9 }
  0x8b   : > { %701 = vmatprep.subr.bf16.mxu0 %v2219_v10  ;;  %741 = vmatpush1.bf16.msra.mxu1 %v2236_v16 }
  0x8c   : > { %742 = vmatprep.subr.bf16.mxu1 %v2239_v17 }
  0x8e   : > { %702 = vmatpush1.bf16.msra.mxu0 %v2228_v13 }
  0x8f   : > { %703 = vmatprep.subr.bf16.mxu0 %v2230_v14  ;;  %743 = vmatpush1.bf16.msra.mxu1 %v2248_v20 }
  0x90   : > { %744 = vmatprep.subr.bf16.mxu1 %v2251_v21 }
  0x92   : > { %704 = vmatpush1.bf16.msra.mxu0 %v2242_v18 }
  0x93   : > { %705 = vmatprep.subr.bf16.mxu0 %v2245_v19  ;;  %745 = vmatpush1.bf16.msra.mxu1 %v2260_v24 }
  0x94   : > { %746 = vmatprep.subr.bf16.mxu1 %v2263_v25 }
  0x96   : > { %706 = vmatpush1.bf16.msra.mxu0 %v2253_v22 }
  0x97   : > { %707 = vmatprep.subr.bf16.mxu0 %v2256_v23  ;;  %747 = vmatpush1.bf16.msra.mxu1 %v2272_v28 }
  0x98   : > { %748 = vmatprep.subr.bf16.mxu1 %v2275_v29 }
  0x9a   : > { %708 = vmatpush1.bf16.msra.mxu0 %v2266_v26 }
  0x9b   : > { %709 = vmatprep.subr.bf16.mxu0 %v2269_v27  ;;  %749 = vmatpush1.bf16.msra.mxu1 %v2282_v32 }
  0x9c   : > { %750 = vmatprep.subr.bf16.mxu1 %v2285_v33 }
  0x9e   : > { %710 = vmatpush1.bf16.msra.mxu0 %v2278_v30 }
  0x9f   : > { %1005 = vmatprep.subr.bf16.mxu0 %v2195_v1  ;;  %751 = vmatpush1.bf16.msra.mxu1 %v2289_v35 }
  0xa0   : > { %1046 = vmatprep.subr.bf16.mxu1 %v2210_v7 }
 0x154   : > { %v420_v38 = vpop.f32.mrb[0].mxu0  ;;  %v461_v47 = vpop.f32.mrb[0].mxu1 }
 0x155   : > { %v468_v39 = vadd.f32 %v420_v38, %v189_v36  ;;  %v422_v40 = vpop.f32.mrb[1].mxu0  ;;  %v463_v48 = vpop.f32.mrb[1].mxu1  ;;  %v470_v54 = vadd.f32 %v461_v47, %v191_v52 }
 0x156   : > { %v469_v41 = vadd.f32 %v422_v40, %v190_v37  ;;  %v424_v42 = vpop.f32.mrb[2].mxu0  ;;  %v471_v49 = vadd.f32 %v463_v48, %v192_v46  ;;  %v465_v50 = vpop.f32.mrb[2].mxu1 }
 0x157   : > { %v1572_v43 = vmul.f32 -1.442695, %v468_v39  ;;  %v425_v44 = vpop.f32.mrb[3].mxu0  ;;  %v466_v51 = vpop.f32.mrb[3].mxu1  ;;  %v1576_v42 = vld [vmem:[%s2180_s3 + $0x28] sm:$0xff] }
 0x158   : > { %v1573_v45 = vmul.f32 -1.442695, %v469_v41  ;;  %v1574_v53 = vmul.f32 -1.442695, %v471_v49  ;;  %v1575_v41 = vld [vmem:[%s2180_s3 + $0x20] sm:$0xff] }
 0x159   : > { %1816 = vpow2.f32 %v1572_v43 }
 0x15a   : > { %1818 = vpow2.f32 %v1573_v45 }
 0x15b   : > { %1820 = vpow2.f32 %v1574_v53 }
 0x15c   : > { %1822 = vtanh.f32 %v470_v54 }
 0x163   : > { %v1817_v55 = vpop.eup %1816 }
 0x164   : > { %v1819_v56 = vpop.eup %1818  ;;  %v475_v57 = vadd.f32 1.0, %v1817_v55  ;;  %v1577_v55 = vld [vmem:[%s2180_s3 + $0x30] sm:$0xff] }
 0x165   : > { %v481_v58 = vadd.f32 1.0, %v1819_v56  ;;  %v1821_v59 = vpop.eup %1820 }
 0x166   : > { %1824 = vrcp.f32 %v475_v57  ;;  %v1823_v60 = vpop.eup %1822  ;;  %v488_v63 = vadd.f32 1.0, %v1821_v59 }
 0x167   : > { %1826 = vrcp.f32 %v481_v58 }
 0x168   : > { %1828 = vrcp.f32 %v488_v63 }
 0x170   : > { %v1825_v62 = vpop.eup %1824 }
 0x171   : > { %v1827_v0 = vpop.eup %1826  ;;  %v492_v31 = vmul.f32 %v1825_v62, %v1823_v60 }
 0x172   : > { %v491_v34 = vmul.f32 %v1827_v0, %v188_v61  ;;  %v1829_v37 = vpop.eup %1828 }
 0x174   : > { %v2333_v36 = vadd.f32 %v492_v31, %v491_v34 }
 0x176   : > { %1830 = vtanh.f32 %v2333_v36 }
 0x180   : > { %v1831_v38 = vpop.eup %1830 }
 0x181   : > { %v495_v39 = vmul.f32 %v1831_v38, %v1829_v37 }
 0x183   : > { %v496_v40 = vpack.c.bf16 %v495_v39, %v495_v39 }
 0x185   : > { %497 = vst [vmem:[%s2191_s27] sm:$0xf] %v496_v40  ;;  %728 = vmatmul.mubr.bf16.vlgmr.msra.gmra.mrb[4].mxu0 %v496_v40  ;;  %769 = vmatmul.mubr.bf16.vlgmr.msra.gmra.mrb[4].mxu1 %v496_v40 }
 0x186   : > { %1006 = vmatpush1.bf16.msra.mxu0 %v2197_v2  ;;  %1047 = vmatpush1.bf16.msra.mxu1 %v2212_v8 }
 0x187   : > { %1007 = vmatprep.subr.bf16.mxu0 %v2202_v4  ;;  %1048 = vmatprep.subr.bf16.mxu1 %v2222_v11 }
 0x188   : > { %1037 = vmatprep.mubr.bf16.mxu0 %v2017_v3  ;;  %1078 = vmatprep.mubr.bf16.mxu1 %v2017_v3 }
 0x18a   : > { %1008 = vmatpush1.bf16.msra.mxu0 %v2205_v5  ;;  %1049 = vmatpush1.bf16.msra.mxu1 %v2224_v12 }
 0x18b   : > { %1009 = vmatprep.subr.bf16.mxu0 %v2208_v6  ;;  %1050 = vmatprep.subr.bf16.mxu1 %v2232_v15 }
 0x18e   : > { %1010 = vmatpush1.bf16.msra.mxu0 %v2215_v9  ;;  %1051 = vmatpush1.bf16.msra.mxu1 %v2236_v16 }
 0x18f   : > { %1011 = vmatprep.subr.bf16.mxu0 %v2219_v10  ;;  %1052 = vmatprep.subr.bf16.mxu1 %v2239_v17 }
 0x192   : > { %1012 = vmatpush1.bf16.msra.mxu0 %v2228_v13  ;;  %1053 = vmatpush1.bf16.msra.mxu1 %v2248_v20 }
 0x193   : > { %1013 = vmatprep.subr.bf16.mxu0 %v2230_v14  ;;  %1054 = vmatprep.subr.bf16.mxu1 %v2251_v21 }
 0x196   : > { %1014 = vmatpush1.bf16.msra.mxu0 %v2242_v18  ;;  %1055 = vmatpush1.bf16.msra.mxu1 %v2260_v24 }
 0x197   : > { %1015 = vmatprep.subr.bf16.mxu0 %v2245_v19  ;;  %1056 = vmatprep.subr.bf16.mxu1 %v2263_v25 }
 0x19a   : > { %1016 = vmatpush1.bf16.msra.mxu0 %v2253_v22  ;;  %1057 = vmatpush1.bf16.msra.mxu1 %v2272_v28 }
 0x19b   : > { %1017 = vmatprep.subr.bf16.mxu0 %v2256_v23  ;;  %1058 = vmatprep.subr.bf16.mxu1 %v2275_v29 }
 0x19e   : > { %1018 = vmatpush1.bf16.msra.mxu0 %v2266_v26  ;;  %1059 = vmatpush1.bf16.msra.mxu1 %v2282_v32 }
 0x19f   : > { %1019 = vmatprep.subr.bf16.mxu0 %v2269_v27  ;;  %1060 = vmatprep.subr.bf16.mxu1 %v2285_v33 }
 0x1a2   : > { %1020 = vmatpush1.bf16.msra.mxu0 %v2278_v30  ;;  %1061 = vmatpush1.bf16.msra.mxu1 %v2289_v35 }
 0x1a3   : > { %1315 = vmatprep.subr.bf16.mxu0 %v2195_v1  ;;  %1356 = vmatprep.subr.bf16.mxu1 %v2210_v7  ;;  %v1578_v1 = vld [vmem:[%s2180_s3 + $0x38] sm:$0xff] }
 0x258   : > { %v729_v43 = vpop.f32.mrb[4].mxu0  ;;  %v770_v44 = vpop.f32.mrb[4].mxu1 }
 0x259   : > { %v777_v45 = vadd.f32 %v1575_v41, %v729_v43  ;;  %v731_v46 = vpop.f32.mrb[5].mxu0  ;;  %v772_v47 = vpop.f32.mrb[5].mxu1  ;;  %v779_v57 = vadd.f32 %v1577_v55, %v770_v44 }
 0x25a   : > { %v778_v48 = vadd.f32 %v1576_v42, %v731_v46  ;;  %v733_v49 = vpop.f32.mrb[6].mxu0  ;;  %v774_v50 = vpop.f32.mrb[6].mxu1  ;;  %v780_v7 = vadd.f32 %v1578_v1, %v772_v47  ;;  %v1655_v47 = vld [vmem:[%s2180_s3 + $0x60] sm:$0xff] }
 0x25b   : > { %v1611_v51 = vmul.f32 -1.442695, %v777_v45  ;;  %v734_v52 = vpop.f32.mrb[7].mxu0  ;;  %v775_v53 = vpop.f32.mrb[7].mxu1 }
 0x25c   : > { %v1612_v54 = vmul.f32 -1.442695, %v778_v48  ;;  %v1613_v56 = vmul.f32 -1.442695, %v780_v7  ;;  %v1656_v48 = vld [vmem:[%s2180_s3 + $0x68] sm:$0xff] }
 0x25d   : > { %1832 = vpow2.f32 %v1611_v51 }
 0x25e   : > { %1834 = vpow2.f32 %v1612_v54 }
 0x25f   : > { %1836 = vpow2.f32 %v1613_v56 }
 0x260   : > { %1838 = vtanh.f32 %v779_v57 }
 0x267   : > { %v1833_v58 = vpop.eup %1832 }
 0x268   : > { %v1835_v59 = vpop.eup %1834  ;;  %v784_v60 = vadd.f32 1.0, %v1833_v58 }
 0x269   : > { %v790_v61 = vadd.f32 1.0, %v1835_v59  ;;  %v1837_v62 = vpop.eup %1836  ;;  %v1658_v59 = vld [vmem:[%s2180_s3 + $0x78] sm:$0xff] }
 0x26a   : > { %1840 = vrcp.f32 %v784_v60  ;;  %v1839_v63 = vpop.eup %1838  ;;  %v797_v37 = vadd.f32 1.0, %v1837_v62 }
 0x26b   : > { %1842 = vrcp.f32 %v790_v61  ;;  %v1657_v61 = vld [vmem:[%s2180_s3 + $0x70] sm:$0xff] }
 0x26c   : > { %1844 = vrcp.f32 %v797_v37 }
 0x274   : > { %v1841_v0 = vpop.eup %1840 }
 0x275   : > { %v1843_v31 = vpop.eup %1842  ;;  %v801_v34 = vmul.f32 %v1841_v0, %v1839_v63 }
 0x276   : > { %v800_v38 = vmul.f32 %v1843_v31, %v2333_v36  ;;  %v1845_v40 = vpop.eup %1844 }
 0x278   : > { %v2376_v39 = vadd.f32 %v801_v34, %v800_v38 }
 0x27a   : > { %1846 = vtanh.f32 %v2376_v39 }
 0x284   : > { %v1847_v41 = vpop.eup %1846 }
 0x285   : > { %v804_v42 = vmul.f32 %v1847_v41, %v1845_v40 }
 0x287   : > { %v805_v43 = vpack.c.bf16 %v804_v42, %v804_v42 }
 0x289   : > { %1614 = vst [vmem:[%s2191_s27 + $0x4] sm:$0xf] %v805_v43  ;;  %1038 = vmatmul.mubr.bf16.vlgmr.msra.gmra.mrb[8].mxu0 %v805_v43  ;;  %1079 = vmatmul.mubr.bf16.vlgmr.msra.gmra.mrb[8].mxu1 %v805_v43 }
 0x28a   : > { %1316 = vmatpush1.bf16.msra.mxu0 %v2197_v2  ;;  %1357 = vmatpush1.bf16.msra.mxu1 %v2212_v8  ;;  %v1615_v2 = vld [vmem:[%s2180_s3 + $0x40] sm:$0xff] }
 0x28b   : > { %1317 = vmatprep.subr.bf16.mxu0 %v2202_v4  ;;  %1358 = vmatprep.subr.bf16.mxu1 %v2222_v11 }
 0x28c   : > { %1347 = vmatprep.mubr.bf16.mxu0 %v2017_v3  ;;  %1388 = vmatprep.mubr.bf16.mxu1 %v2017_v3  ;;  %v1616_v3 = vld [vmem:[%s2180_s3 + $0x48] sm:$0xff] }
 0x28e   : > { %1318 = vmatpush1.bf16.msra.mxu0 %v2205_v5  ;;  %1359 = vmatpush1.bf16.msra.mxu1 %v2224_v12 }
 0x28f   : > { %1319 = vmatprep.subr.bf16.mxu0 %v2208_v6  ;;  %1360 = vmatprep.subr.bf16.mxu1 %v2232_v15 }
 0x292   : > { %1320 = vmatpush1.bf16.msra.mxu0 %v2215_v9  ;;  %1361 = vmatpush1.bf16.msra.mxu1 %v2236_v16 }
 0x293   : > { %1321 = vmatprep.subr.bf16.mxu0 %v2219_v10  ;;  %1362 = vmatprep.subr.bf16.mxu1 %v2239_v17  ;;  %v1618_v17 = vld [vmem:[%s2180_s3 + $0x58] sm:$0xff] }
 0x296   : > { %1322 = vmatpush1.bf16.msra.mxu0 %v2228_v13  ;;  %1363 = vmatpush1.bf16.msra.mxu1 %v2248_v20 }
 0x297   : > { %1323 = vmatprep.subr.bf16.mxu0 %v2230_v14  ;;  %1364 = vmatprep.subr.bf16.mxu1 %v2251_v21 }
 0x29a   : > { %1324 = vmatpush1.bf16.msra.mxu0 %v2242_v18  ;;  %1365 = vmatpush1.bf16.msra.mxu1 %v2260_v24 }
 0x29b   : > { %1325 = vmatprep.subr.bf16.mxu0 %v2245_v19  ;;  %1366 = vmatprep.subr.bf16.mxu1 %v2263_v25  ;;  %v1617_v19 = vld [vmem:[%s2180_s3 + $0x50] sm:$0xff] }
 0x29e   : > { %1326 = vmatpush1.bf16.msra.mxu0 %v2253_v22  ;;  %1367 = vmatpush1.bf16.msra.mxu1 %v2272_v28 }
 0x29f   : > { %1327 = vmatprep.subr.bf16.mxu0 %v2256_v23  ;;  %1368 = vmatprep.subr.bf16.mxu1 %v2275_v29 }
 0x2a2   : > { %1328 = vmatpush1.bf16.msra.mxu0 %v2266_v26  ;;  %1369 = vmatpush1.bf16.msra.mxu1 %v2282_v32 }
 0x2a3   : > { %1329 = vmatprep.subr.bf16.mxu0 %v2269_v27  ;;  %1370 = vmatprep.subr.bf16.mxu1 %v2285_v33 }
 0x2a6   : > { %1330 = vmatpush1.bf16.msra.mxu0 %v2278_v30  ;;  %1371 = vmatpush1.bf16.msra.mxu1 %v2289_v35 }
 0x35c   : > { %v1039_v4 = vpop.f32.mrb[8].mxu0  ;;  %v1080_v5 = vpop.f32.mrb[8].mxu1 }
 0x35d   : > { %v1087_v6 = vadd.f32 %v1615_v2, %v1039_v4  ;;  %v1041_v8 = vpop.f32.mrb[9].mxu0  ;;  %v1082_v9 = vpop.f32.mrb[9].mxu1  ;;  %v1089_v21 = vadd.f32 %v1617_v19, %v1080_v5 }
 0x35e   : > { %v1088_v10 = vadd.f32 %v1616_v3, %v1041_v8  ;;  %v1043_v11 = vpop.f32.mrb[10].mxu0  ;;  %v1084_v12 = vpop.f32.mrb[10].mxu1  ;;  %v1090_v18 = vadd.f32 %v1618_v17, %v1082_v9 }
 0x35f   : > { %v1651_v13 = vmul.f32 -1.442695, %v1087_v6  ;;  %v1044_v14 = vpop.f32.mrb[11].mxu0  ;;  %v1085_v15 = vpop.f32.mrb[11].mxu1 }
 0x360   : > { %v1652_v16 = vmul.f32 -1.442695, %v1088_v10  ;;  %v1653_v20 = vmul.f32 -1.442695, %v1090_v18 }
 0x361   : > { %1848 = vpow2.f32 %v1651_v13 }
 0x362   : > { %1850 = vpow2.f32 %v1652_v16 }
 0x363   : > { %1852 = vpow2.f32 %v1653_v20 }
 0x364   : > { %1854 = vtanh.f32 %v1089_v21 }
 0x36b   : > { %v1849_v22 = vpop.eup %1848 }
 0x36c   : > { %v1851_v23 = vpop.eup %1850  ;;  %v1094_v24 = vadd.f32 1.0, %v1849_v22 }
 0x36d   : > { %v1100_v25 = vadd.f32 1.0, %v1851_v23  ;;  %v1853_v26 = vpop.eup %1852 }
 0x36e   : > { %1856 = vrcp.f32 %v1094_v24  ;;  %v1855_v27 = vpop.eup %1854  ;;  %v1107_v32 = vadd.f32 1.0, %v1853_v26 }
 0x36f   : > { %1858 = vrcp.f32 %v1100_v25 }
 0x370   : > { %1860 = vrcp.f32 %v1107_v32 }
 0x378   : > { %v1857_v28 = vpop.eup %1856 }
 0x379   : > { %v1859_v29 = vpop.eup %1858  ;;  %v1111_v30 = vmul.f32 %v1857_v28, %v1855_v27 }
 0x37a   : > { %v1110_v33 = vmul.f32 %v1859_v29, %v2376_v39  ;;  %v1861_v36 = vpop.eup %1860 }
 0x37c   : > { %v1112_v35 = vadd.f32 %v1111_v30, %v1110_v33 }
 0x37e   : > { %1862 = vtanh.f32 %v1112_v35 }
 0x388   : > { %v1863_v44 = vpop.eup %1862 }
 0x389   : > { %v1114_v45 = vmul.f32 %v1863_v44, %v1861_v36 }
 0x38b   : > { %v1115_v46 = vpack.c.bf16 %v1114_v45, %v1114_v45 }
 0x38d   : > { %1654 = vst [vmem:[%s2191_s27 + $0x8] sm:$0xf] %v1115_v46  ;;  %1348 = vmatmul.mubr.bf16.vlgmr.msra.gmra.mrb[12].mxu0 %v1115_v46  ;;  %1389 = vmatmul.mubr.bf16.vlgmr.msra.gmra.mrb[12].mxu1 %v1115_v46 }
 0x460   : > { %v1349_v49 = vpop.f32.mrb[12].mxu0  ;;  %v1390_v50 = vpop.f32.mrb[12].mxu1 }
 0x461   : > { %v1397_v51 = vadd.f32 %v1655_v47, %v1349_v49  ;;  %v1351_v52 = vpop.f32.mrb[13].mxu0  ;;  %v1392_v53 = vpop.f32.mrb[13].mxu1  ;;  %v1399_v63 = vadd.f32 %v1657_v61, %v1390_v50 }
 0x462   : > { %v1398_v54 = vadd.f32 %v1656_v48, %v1351_v52  ;;  %v1353_v1 = vpop.f32.mrb[14].mxu0  ;;  %v1394_v7 = vpop.f32.mrb[14].mxu1  ;;  %v1400_v60 = vadd.f32 %v1658_v59, %v1392_v53 }
 0x463   : > { %v1691_v55 = vmul.f32 -1.442695, %v1397_v51  ;;  %v1354_v56 = vpop.f32.mrb[15].mxu0  ;;  %v1395_v57 = vpop.f32.mrb[15].mxu1 }
 0x464   : > { %v1692_v58 = vmul.f32 -1.442695, %v1398_v54  ;;  %v1693_v62 = vmul.f32 -1.442695, %v1400_v60 }
 0x465   : > { %1864 = vpow2.f32 %v1691_v55 }
 0x466   : > { %1866 = vpow2.f32 %v1692_v58 }
 0x467   : > { %1868 = vpow2.f32 %v1693_v62 }
 0x468   : > { %1870 = vtanh.f32 %v1399_v63 }
 0x46f   : > { %v1865_v0 = vpop.eup %1864 }
 0x470   : > { %v1867_v31 = vpop.eup %1866  ;;  %v1404_v34 = vadd.f32 1.0, %v1865_v0 }
 0x471   : > { %v1410_v37 = vadd.f32 1.0, %v1867_v31  ;;  %v1869_v38 = vpop.eup %1868 }
 0x472   : > { %1872 = vrcp.f32 %v1404_v34  ;;  %v1871_v39 = vpop.eup %1870  ;;  %v1417_v43 = vadd.f32 1.0, %v1869_v38 }
 0x473   : > { %1874 = vrcp.f32 %v1410_v37 }
 0x474   : > { %1876 = vrcp.f32 %v1417_v43 }
 0x47c   : > { %v1873_v40 = vpop.eup %1872 }
 0x47d   : > { %v1875_v41 = vpop.eup %1874  ;;  %v1421_v42 = vmul.f32 %v1873_v40, %v1871_v39 }
 0x47e   : > { %v1420_v2 = vmul.f32 %v1875_v41, %v1112_v35  ;;  %v1877_v4 = vpop.eup %1876 }
 0x480   : > { %v1422_v3 = vadd.f32 %v1421_v42, %v1420_v2 }
 0x482   : > { %1878 = vtanh.f32 %v1422_v3  ;;  %1429 = vst [vmem:[#allocation3] sm:$0xff] %v1422_v3 }
 0x48c   : > { %v1879_v5 = vpop.eup %1878 }
 0x48d   : > { %v1424_v6 = vmul.f32 %v1879_v5, %v1877_v4 }
 0x48f   : > { %v1425_v8 = vpack.c.bf16 %v1424_v6, %v1424_v6  ;;  %1428 = vst [vmem:[#allocation2] sm:$0xff] %v1424_v6 }
 0x491   : > { %1694 = vst [vmem:[%s2191_s27 + $0xc] sm:$0xf] %v1425_v8 }
 0x492   : > { %1951 = shalt.err (!%p1948_p10)
}
 0x493   : > { %s1952_s24 = scalar_lea.hbm %s2427_s4, 256  ;;  %s1956_s26 = scalar_lea.hbm %s2476_s2, 512 }
 0x494   : > { %p1953_p2 = scmp.ne.s32.totalorder %s2427_s4, %s1952_s24  ;;  %p1957_p12 = scmp.lt.u32.totalorder %s2427_s4, %s2476_s2 }
 0x495   : > { %p1958_p1 = scmp.lt.u32.totalorder %s1956_s26, %s1952_s24  ;;  %p1960_p6 = scmp.lt.u32.totalorder %s1952_s24, %s2427_s4 }
 0x496   : > { %p1954_p0 = pnand %p1953_p2, %p2128_p11 }
 0x497   : > { %p1959_p4 = por %p1958_p1, %p1957_p12 }
 0x498   : > { %p1955_p5 = pneg %p1954_p0 }
 0x499   : > { %p1961_p8 = por %p1960_p6, %p1959_p4 }
 0x49b   : > { %p1962_p9 = pnand %p1961_p8, %p1955_p5 }
 0x49d   : > { %1965 = shalt.err (!%p1962_p9)
}
 0x49e   : > { %s2019_s3 = smov 64   ;;  %s2020_s17 = smov 4  }
 0x49f   : > { %1709 = dma.vmem_to_hbm [thread:$0]  (%p2128_p11), %s2429_s22, 256, %s2427_s4, %s1431_s5, %s2019_s3, %s2019_s3, %s2020_s17  }
 0x4a0 PF: > { %s1459_s27 = sand.u32 1, %s1996_s9   ;;  %p2492_p13 = scmp.ne.s32.totalorder %s2481_s16, 0 }
 0x4a1   : > { %p2493_p3 = scmp.ge.s32.totalorder %s2008_s12, 2  ;;  %s1460_s15 = scalar_lea.sflag [#allocation6], %s1459_s27 }
 0x4a3   : > { %p1720_p7 = pnand %p2493_p3, %p2492_p13 }
 0x4a5   : > { %1991 = dma.done.wait (!%p1720_p7), %s1460_s15, 256  }
 0x4a6   : > { %1993 = vsyncadd (!%p1720_p7), %s1460_s15, 4294967040  ;;  %p16_p10 = scmp.ge.s32.totalorder %s2093_s21, 4   ;;  %s2494_s9 = smov %s2000_s10 }
 0x4a7   : > { %s2495_s10 = smov %s2004_s11  ;;  %s2496_s11 = smov %s2124_s8 }
 0x4a8   : > { %s2497_s12 = smov %s2093_s21  ;;  %18 = sbr.rel (!%p16_p10) target bundleno = 6 (0x6), region = 87 }
 0x4af   :  { %1465 = vsyncpa [#allocation5], 1 }
 0x4b0   :  { %1467 = vsyncpa [#allocation5 + $0x1], 1 }
 0x4b1   :  { %1468 = vsyncpa [#allocation8], 1 }
 0x4b2   :  { %1469 = vsyncpa [#allocation6], 1 }
 0x4b3   :  { %1471 = vsyncpa [#allocation6 + $0x1], 1 }

</bundles_post_ra>
